<compile_context>
chip_gen: v6e
topology: v6e:2x2x1
jax: 0.10.0
libtpu: 0.0.40
codegen_flags: <defaults>
</compile_context>

<pallas_src>
import functools

import jax
import jax.numpy as jnp
from jax.experimental import pallas as pl
from jax.experimental.pallas import tpu as pltpu

LANE = 128     # vreg lane width (last dim)
SUBLANE = 8    # f32 sublane count (second-to-last dim)


def _round_up(x, m):
    return ((x + m - 1) // m) * m


# ----------------------------------------------------------------------------
# Fused kernel: whole MLP in one body.
#   refs = (x_ref, w1, s1, w2, s2, ..., wN, sN, o_ref)
#   h = x; for each layer: h = h @ W + shift; LeakyReLU on all but the last.
#   The output ref carries the TRUE dims_out width; slice before the store.
# ----------------------------------------------------------------------------
def _fused_mlp_kernel(*refs, n_layers, neg_slope):
    x_ref = refs[0]
    o_ref = refs[-1]
    p = refs[1:-1]

    h = x_ref[...].astype(jnp.float32)
    for li in range(n_layers):
        w = p[2 * li][...]
        s = p[2 * li + 1][...]
        h = jnp.dot(h, w, preferred_element_type=jnp.float32) + s
        if li < n_layers - 1:
            h = jnp.where(h >= 0.0, h, neg_slope * h)   # LeakyReLU
    # Narrow (true-width) store; padded columns of the last layer are dropped.
    o_ref[...] = h[:, : o_ref.shape[-1]].astype(o_ref.dtype)


# ----------------------------------------------------------------------------
# Parameter construction (raw, PyTorch-equivalent shapes) and one-time
# fold + pad into kernel operands.
# ----------------------------------------------------------------------------
def init_fcseebeck_params(key, dims_in, dims_out, internal_size):
    sizes = [dims_in] + list(internal_size) + [dims_out]
    params = []
    for li in range(len(sizes) - 1):
        din, dout = sizes[li], sizes[li + 1]
        key, kw, kb, kg, kbt, km, kv = jax.random.split(key, 7)
        bound = 1.0 / jnp.sqrt(jnp.float32(din))
        W = jax.random.uniform(kw, (dout, din), jnp.float32, -bound, bound)
        b = jax.random.uniform(kb, (dout,), jnp.float32, -bound, bound)
        # BatchNorm1d params / running stats (non-trivial, deterministic).
        gamma = 1.0 + 0.1 * jax.random.normal(kg, (dout,), jnp.float32)
        beta = 0.1 * jax.random.normal(kbt, (dout,), jnp.float32)
        running_mean = 0.1 * jax.random.normal(km, (dout,), jnp.float32)
        running_var = 1.0 + 0.1 * jax.random.uniform(kv, (dout,), jnp.float32)
        params.append(dict(W=W, b=b, gamma=gamma, beta=beta,
                           mean=running_mean, var=running_var))
    return params


def fold_and_pad_params(raw_params, eps=1e-5):
    """Fold bias + eval-BN into (W', shift').

    K (input) dim of layer 0 is kept at its TRUE width (x is not lane-padded);
    all N (output) dims are zero-padded to the 128-lane width so the matmuls
    stay lane-dense.  Padded rows/cols and shifts are exactly zero, so the
    valid columns are numerically identical and sliced in-kernel.
    """
    fused = []
    for li, p in enumerate(raw_params):
        dout, din = p["W"].shape
        scale = p["gamma"] / jnp.sqrt(p["var"] + eps)
        shift = p["beta"] - p["mean"] * scale
        w_f = p["W"].T * scale[None, :]            # (din, dout)
        s_f = p["b"] * scale + shift               # (dout,)
        din_p = din if li == 0 else _round_up(din, LANE)
        dout_p = _round_up(dout, LANE)
        w_pad = jnp.zeros((din_p, dout_p), jnp.float32).at[:din, :dout].set(w_f)
        s_pad = jnp.zeros((1, dout_p), jnp.float32).at[0, :dout].set(s_f)
        fused.append((w_pad, s_pad))
    return fused


def _resident_spec(shape):
    """Weights/shifts: identical block every grid step -> single-buffered."""
    idx = lambda i: (0, 0)
    try:
        return pl.BlockSpec(shape, idx, pipeline_mode=pl.Buffered(1))
    except Exception:
        # Older jax without pipeline_mode support: default double-buffering
        # (correct, just wastes ~0.2 MiB of VMEM here).
        return pl.BlockSpec(shape, idx)


# ----------------------------------------------------------------------------
# Forward: single pallas_call.
#   * B <= target_block_batch : gridless, everything resident in VMEM.
#   * larger B                : batch tiled on one "parallel" grid axis
#                               (megacore / v7x), weights resident.
# ----------------------------------------------------------------------------
def fcseebeck_forward(fused_params, x, dims_out, *, neg_slope=0.01,
                      target_block_batch=4096,
                      vmem_limit_bytes=32 * 1024 * 1024):
    n_layers = len(fused_params)
    B, din = x.shape
    assert din == fused_params[0][0].shape[0], "input width mismatch"

    flat = []
    for w, s in fused_params:
        flat += [w, s]

    kernel = functools.partial(_fused_mlp_kernel, n_layers=n_layers,
                               neg_slope=neg_slope)

    if B <= target_block_batch:
        # Gridless call: full-array blocks (always layout-legal), no padding of
        # any dim, true-width input read and true-width output write.
        return pl.pallas_call(
            kernel,
            out_shape=jax.ShapeDtypeStruct((B, dims_out), jnp.float32),
            compiler_params=pltpu.CompilerParams(
                vmem_limit_bytes=vmem_limit_bytes),
        )(x, *flat)

    # Batch-tiled path.  Clamp the tile so there are always >= 2 tiles
    # (v7x: 2 TensorCores share the "parallel" axis).  A ragged last tile is
    # handled by Pallas boundary clipping (no wrapper-side row padding).
    block_batch = min(target_block_batch, _round_up(pl.cdiv(B, 2), SUBLANE))
    n_tiles = pl.cdiv(B, block_batch)

    in_specs = [pl.BlockSpec((block_batch, din), lambda i: (i, 0))]
    for w, s in fused_params:
        in_specs.append(_resident_spec(w.shape))
        in_specs.append(_resident_spec(s.shape))

    return pl.pallas_call(
        kernel,
        out_shape=jax.ShapeDtypeStruct((B, dims_out), jnp.float32),
        grid=(n_tiles,),
        in_specs=in_specs,
        out_specs=pl.BlockSpec((block_batch, dims_out), lambda i: (i, 0)),
        compiler_params=pltpu.CompilerParams(
            dimension_semantics=("parallel",),
            vmem_limit_bytes=vmem_limit_bytes),
    )(x, *flat)


# ----------------------------------------------------------------------------
# Pure-JAX reference (unfused, raw params) for verification.
# ----------------------------------------------------------------------------
def fcseebeck_reference(raw_params, x, eps=1e-5, neg_slope=0.01):
    n = len(raw_params)
    for i, p in enumerate(raw_params):
        y = x @ p["W"].T + p["b"]
        scale = p["gamma"] / jnp.sqrt(p["var"] + eps)
        y = (y - p["mean"]) * scale + p["beta"]
        if i < n - 1:
            y = jnp.where(y >= 0.0, y, neg_slope * y)
        x = y
    return x


if __name__ == "__main__":
    key = jax.random.PRNGKey(0)
    k_params, k_x, k_x_big = jax.random.split(key, 3)

    # FCSeebeck(dims_in=8, dims_out=4, internal_size=[32, 32],
    #           dropout=[0.1, 0.1, 0.1])  -- eval mode.
    dims_in, dims_out = 8, 4
    internal_size = [32, 32]
    batch = 16

    raw_params = init_fcseebeck_params(k_params, dims_in, dims_out,
                                       internal_size)
    fused_params = fold_and_pad_params(raw_params)

    # --- small batch: gridless fused path ------------------------------------
    x = jax.random.normal(k_x, (batch, dims_in), jnp.float32)
    out = jax.block_until_ready(fcseebeck_forward(fused_params, x, dims_out))
    ref = fcseebeck_reference(raw_params, x)
    assert out.shape == (batch, dims_out)
    assert jnp.allclose(out, ref, atol=1e-4, rtol=1e-4), "mismatch (small batch)"

    # --- larger batch with a small tile target: batch-tiled "parallel" path ---
    big_batch = 1024
    x_big = jax.random.normal(k_x_big, (big_batch, dims_in), jnp.float32)
    out_big = jax.block_until_ready(
        fcseebeck_forward(fused_params, x_big, dims_out,
                          target_block_batch=256))
    ref_big = fcseebeck_reference(raw_params, x_big)
    assert out_big.shape == (big_batch, dims_out)
    assert jnp.allclose(out_big, ref_big, atol=1e-4, rtol=1e-4), \
        "mismatch (large batch)"

    print("KERNEL_OK")
</pallas_src>

<mosaic_0001>
module attributes {stable_mosaic.version = 11 : i64} {
  func.func @_fused_mlp_kernel(%arg0: memref<16x8xf32, #tpu.memory_space<vmem>>, %arg1: memref<8x128xf32, #tpu.memory_space<vmem>>, %arg2: memref<1x128xf32, #tpu.memory_space<vmem>>, %arg3: memref<128x128xf32, #tpu.memory_space<vmem>>, %arg4: memref<1x128xf32, #tpu.memory_space<vmem>>, %arg5: memref<128x128xf32, #tpu.memory_space<vmem>>, %arg6: memref<1x128xf32, #tpu.memory_space<vmem>>, %arg7: memref<16x4xf32, #tpu.memory_space<vmem>>) attributes {dimension_semantics = [], scalar_prefetch = 0 : i64, scratch_operands = 0 : i64, tpu.core_type = #tpu.core_type<tc>} {
    %c0 = arith.constant 0 : index
    %c0_0 = arith.constant 0 : index
    %0 = vector.load %arg0[%c0, %c0_0] : memref<16x8xf32, #tpu.memory_space<vmem>>, vector<16x8xf32>
    %c0_1 = arith.constant 0 : index
    %c0_2 = arith.constant 0 : index
    %1 = vector.load %arg1[%c0_1, %c0_2] : memref<8x128xf32, #tpu.memory_space<vmem>>, vector<8x128xf32>
    %c0_3 = arith.constant 0 : index
    %c0_4 = arith.constant 0 : index
    %2 = vector.load %arg2[%c0_3, %c0_4] : memref<1x128xf32, #tpu.memory_space<vmem>>, vector<1x128xf32>
    %cst = arith.constant dense<0.000000e+00> : vector<16x128xf32>
    %3 = tpu.matmul %0, %1, %cst {dimension_numbers = #tpu.dot_dimension_numbers<[1], [0], [0], [1], [0, 0, 1, 1], [], []>} : vector<16x8xf32>, vector<8x128xf32>, vector<16x128xf32> -> vector<16x128xf32>
    %4 = vector.broadcast %2 : vector<1x128xf32> to vector<16x128xf32>
    %5 = arith.addf %3, %4 : vector<16x128xf32>
    %cst_5 = arith.constant 0.000000e+00 : f32
    %6 = vector.broadcast %cst_5 : f32 to vector<16x128xf32>
    %7 = arith.cmpf oge, %5, %6 : vector<16x128xf32>
    %cst_6 = arith.constant 0.00999999977 : f32
    %8 = vector.broadcast %cst_6 : f32 to vector<16x128xf32>
    %9 = arith.mulf %8, %5 : vector<16x128xf32>
    %10 = arith.select %7, %5, %9 : vector<16x128xi1>, vector<16x128xf32>
    %c0_7 = arith.constant 0 : index
    %c0_8 = arith.constant 0 : index
    %11 = vector.load %arg3[%c0_7, %c0_8] : memref<128x128xf32, #tpu.memory_space<vmem>>, vector<128x128xf32>
    %c0_9 = arith.constant 0 : index
    %c0_10 = arith.constant 0 : index
    %12 = vector.load %arg4[%c0_9, %c0_10] : memref<1x128xf32, #tpu.memory_space<vmem>>, vector<1x128xf32>
    %cst_11 = arith.constant dense<0.000000e+00> : vector<16x128xf32>
    %13 = tpu.matmul %10, %11, %cst_11 {dimension_numbers = #tpu.dot_dimension_numbers<[1], [0], [0], [1], [0, 0, 1, 1], [], []>} : vector<16x128xf32>, vector<128x128xf32>, vector<16x128xf32> -> vector<16x128xf32>
    %14 = vector.broadcast %12 : vector<1x128xf32> to vector<16x128xf32>
    %15 = arith.addf %13, %14 : vector<16x128xf32>
    %cst_12 = arith.constant 0.000000e+00 : f32
    %16 = vector.broadcast %cst_12 : f32 to vector<16x128xf32>
    %17 = arith.cmpf oge, %15, %16 : vector<16x128xf32>
    %cst_13 = arith.constant 0.00999999977 : f32
    %18 = vector.broadcast %cst_13 : f32 to vector<16x128xf32>
    %19 = arith.mulf %18, %15 : vector<16x128xf32>
    %20 = arith.select %17, %15, %19 : vector<16x128xi1>, vector<16x128xf32>
    %c0_14 = arith.constant 0 : index
    %c0_15 = arith.constant 0 : index
    %21 = vector.load %arg5[%c0_14, %c0_15] : memref<128x128xf32, #tpu.memory_space<vmem>>, vector<128x128xf32>
    %c0_16 = arith.constant 0 : index
    %c0_17 = arith.constant 0 : index
    %22 = vector.load %arg6[%c0_16, %c0_17] : memref<1x128xf32, #tpu.memory_space<vmem>>, vector<1x128xf32>
    %cst_18 = arith.constant dense<0.000000e+00> : vector<16x128xf32>
    %23 = tpu.matmul %20, %21, %cst_18 {dimension_numbers = #tpu.dot_dimension_numbers<[1], [0], [0], [1], [0, 0, 1, 1], [], []>} : vector<16x128xf32>, vector<128x128xf32>, vector<16x128xf32> -> vector<16x128xf32>
    %24 = vector.broadcast %22 : vector<1x128xf32> to vector<16x128xf32>
    %25 = arith.addf %23, %24 : vector<16x128xf32>
    %26 = vector.extract_strided_slice %25 {offsets = [0, 0], sizes = [16, 4], strides = [1, 1]} : vector<16x128xf32> to vector<16x4xf32>
    %c0_19 = arith.constant 0 : index
    %c0_20 = arith.constant 0 : index
    %27 = vector.load %arg7[%c0_19, %c0_20] : memref<16x4xf32, #tpu.memory_space<vmem>>, vector<16x4xf32>
    tpu.vector_store %arg7[%c0_19, %c0_20], %26 {strides = array<i32>} : memref<16x4xf32, #tpu.memory_space<vmem>>, vector<16x4xf32>,
    return
  }
}

</mosaic_0001>

<bundles_post_ra>
// kernel: tpu_custom_call.1
= control target key start
LH: loop header
LB: loop body
LE: loop exit
PB: predicated region body
PF: predicated region fallthrough
CT: control target
= control target key end

     0   :  { %12 = vsyncpa [#allocation3], 0  ;;  %s604_s0 = inlined_call_operand.vmem [shape: f32[16,8], index: 0, kind: input, shape index: {}]   ;;  %s605_s1 = inlined_call_operand.vmem [shape: f32[8,128], index: 1, kind: input, shape index: {}]   ;;  %s606_s2 = inlined_call_operand.vmem [shape: f32[1,128], index: 2, kind: input, shape index: {}]   ;;  %s607_s3 = inlined_call_operand.hbm [shape: f32[128,128], index: 3, kind: input, shape index: {}]   ;;  %s608_s4 = inlined_call_operand.vmem [shape: f32[1,128], index: 4, kind: input, shape index: {}]   ;;  %s609_s5 = inlined_call_operand.hbm [shape: f32[128,128], index: 5, kind: input, shape index: {}]   ;;  %s610_s6 = inlined_call_operand.vmem [shape: f32[1,128], index: 6, kind: input, shape index: {}]   ;;  %s611_s7 = inlined_call_operand.vmem [shape: f32[16,4], index: 7, kind: output, shape index: {}]  }
   0x1   :  { %13 = vsyncpa [#allocation5], 0  ;;  %s530_s24 = smov [#allocation2]  }
   0x2   :  { %s25_s25 = sshll.u32 %s530_s24, 4  ;;  %s26_s25 = int_to_ptr.vmem [resolvable:$true] %s25_s25 }
   0x3   :  { %s494_s26 = scalar_lea.vmem %s26_s25, 2048  ;;  %p499_p1 = scmp.lt.s32.totalorder %s26_s25, %s26_s25 }
   0x4   :  { %p495_p0 = scmp.ne.s32.totalorder %s26_s25, %s494_s26  ;;  %p500_p2 = scmp.lt.s32.totalorder %s494_s26, %s494_s26 }
   0x6   :  { %p501_p3 = por %p500_p2, %p499_p1 }
   0x8   :  { %p502_p4 = pnand %p501_p3, %p495_p0 }
   0xa   :  { %505 = shalt.err (!%p502_p4)
}
   0xb   :  { %s531_s27 = smov 128   ;;  %s532_s28 = smov 8  }
   0xc   :  { %31 = dma.hbm_to_vmem [thread:$0]  %s607_s3, 2048, %s26_s25, [#allocation3], %s531_s27, %s531_s27, %s532_s28  }
   0xd   :  { %s533_s8 = smov [#allocation4]  }
   0xe   :  { %s39_s9 = sshll.u32 %s533_s8, 4  ;;  %s40_s9 = int_to_ptr.vmem [resolvable:$true] %s39_s9 }
   0xf   :  { %s514_s10 = scalar_lea.vmem %s40_s9, 2048  ;;  %p519_p6 = scmp.lt.s32.totalorder %s40_s9, %s40_s9 }
  0x10   :  { %p515_p5 = scmp.ne.s32.totalorder %s40_s9, %s514_s10  ;;  %p520_p7 = scmp.lt.s32.totalorder %s514_s10, %s514_s10 }
  0x12   :  { %p521_p8 = por %p520_p7, %p519_p6 }
  0x14   :  { %p522_p9 = pnand %p521_p8, %p515_p5 }
  0x16   :  { %525 = shalt.err (!%p522_p9)
}
  0x17   :  { %45 = dma.hbm_to_vmem [thread:$0]  %s609_s5, 2048, %s40_s9, [#allocation5], %s531_s27, %s531_s27, %s532_s28  }
  0x18   :  { %526 = dma.done.wait [#allocation3], 2048  }
  0x19   :  { %527 = vsyncadd [#allocation3], 4294965248 }
  0x1a   :  { %528 = dma.done.wait [#allocation5], 2048  }
  0x1b   :  { %529 = vsyncadd [#allocation5], 4294965248  ;;  %vm64_vm0 = vcmask 64512   ;;  %v56_v0 = vld [vmem:[%s605_s1] sm:$0xff]  ;;  %v55_v2 = vld [vmem:[%s604_s0 + $0x8] sm:$0xff]  ;;  %vm354_vm5 = vcmask 31744  }
  0x1c   :  { %v54_v1 = vld [vmem:[%s604_s0] sm:$0xff]  ;;  %407 = vmatprep.subr.mxu0 %v56_v0  ;;  %v167_v3 = vld [vmem:[#allocation2 + $0x78] sm:$0xff]  ;;  %v166_v4 = vld [vmem:[#allocation2 + $0x70] sm:$0xff] }
  0x1d   :  { %409 = vmatprep.mubr.msk.f32.mxu0 %vm64_vm0, %v54_v1  ;;  %408 = vmatpush3.msra.mxu0 %v56_v0  ;;  %v165_v5 = vld [vmem:[#allocation2 + $0x68] sm:$0xff]  ;;  %v164_v6 = vld [vmem:[#allocation2 + $0x60] sm:$0xff]  ;;  %v163_v7 = vld [vmem:[#allocation2 + $0x58] sm:$0xff] }
  0x1e   :  { %412 = vmatprep.subr.mxu1 %v167_v3  ;;  %410 = vmatmul.mubr.msk.f32.vlgmr.msra.gmra.mxu0 %vm64_vm0, %v55_v2  ;;  %v162_v8 = vld [vmem:[#allocation2 + $0x50] sm:$0xff]  ;;  %v161_v9 = vld [vmem:[#allocation2 + $0x48] sm:$0xff]  ;;  %v160_v10 = vld [vmem:[#allocation2 + $0x40] sm:$0xff] }
  0x1f   :  { %413 = vmatpush3.msra.mxu1 %v167_v3  ;;  %v159_v11 = vld [vmem:[#allocation2 + $0x38] sm:$0xff]  ;;  %v158_v12 = vld [vmem:[#allocation2 + $0x30] sm:$0xff]  ;;  %v157_v13 = vld [vmem:[#allocation2 + $0x28] sm:$0xff] }
  0x20   :  { %414 = vmatprep.subr.mxu1 %v166_v4  ;;  %v156_v14 = vld [vmem:[#allocation2 + $0x20] sm:$0xff]  ;;  %v155_v15 = vld [vmem:[#allocation2 + $0x18] sm:$0xff]  ;;  %v154_v16 = vld [vmem:[#allocation2 + $0x10] sm:$0xff] }
  0x21   :  { %415 = vmatpush3.msra.mxu1 %v166_v4  ;;  %v153_v17 = vld [vmem:[#allocation2 + $0x8] sm:$0xff]  ;;  %v152_v18 = vld [vmem:[#allocation2] sm:$0xff]  ;;  %v271_v19 = vld [vmem:[#allocation4 + $0x78] sm:$0xff] }
  0x22   :  { %416 = vmatprep.subr.mxu1 %v165_v5  ;;  %v270_v20 = vld [vmem:[#allocation4 + $0x70] sm:$0xff]  ;;  %447 = vmatprep.subr.mxu0 %v271_v19  ;;  %v269_v21 = vld [vmem:[#allocation4 + $0x68] sm:$0xff]  ;;  %v268_v22 = vld [vmem:[#allocation4 + $0x60] sm:$0xff] }
  0x23   :  { %417 = vmatpush3.msra.mxu1 %v165_v5  ;;  %448 = vmatpush3.msra.mxu0 %v271_v19  ;;  %v267_v23 = vld [vmem:[#allocation4 + $0x58] sm:$0xff]  ;;  %v266_v24 = vld [vmem:[#allocation4 + $0x50] sm:$0xff]  ;;  %v265_v25 = vld [vmem:[#allocation4 + $0x48] sm:$0xff] }
  0x24   :  { %418 = vmatprep.subr.mxu1 %v164_v6  ;;  %449 = vmatprep.subr.mxu0 %v270_v20  ;;  %v264_v26 = vld [vmem:[#allocation4 + $0x40] sm:$0xff]  ;;  %v263_v27 = vld [vmem:[#allocation4 + $0x38] sm:$0xff]  ;;  %v262_v28 = vld [vmem:[#allocation4 + $0x30] sm:$0xff] }
  0x25   :  { %419 = vmatpush3.msra.mxu1 %v164_v6  ;;  %450 = vmatpush3.msra.mxu0 %v270_v20  ;;  %v261_v29 = vld [vmem:[#allocation4 + $0x28] sm:$0xff]  ;;  %v260_v30 = vld [vmem:[#allocation4 + $0x20] sm:$0xff]  ;;  %v259_v40 = vld [vmem:[#allocation4 + $0x18] sm:$0xff] }
  0x26   :  { %420 = vmatprep.subr.mxu1 %v163_v7  ;;  %451 = vmatprep.subr.mxu0 %v269_v21  ;;  %v363_v31 = vld [vmem:[%s606_s2] ss:$0 sm:$0xff]  ;;  %v258_v41 = vld [vmem:[#allocation4 + $0x10] sm:$0xff]  ;;  %v257_v42 = vld [vmem:[#allocation4 + $0x8] sm:$0xff] }
  0x27   :  { %421 = vmatpush3.msra.mxu1 %v163_v7  ;;  %452 = vmatpush3.msra.mxu0 %v269_v21  ;;  %v256_v43 = vld [vmem:[#allocation4] sm:$0xff] }
  0x28   :  { %422 = vmatprep.subr.mxu1 %v162_v8  ;;  %453 = vmatprep.subr.mxu0 %v268_v22  ;;  %v366_v44 = vld [vmem:[%s608_s4] ss:$0 sm:$0xff] }
  0x29   :  { %423 = vmatpush3.msra.mxu1 %v162_v8  ;;  %454 = vmatpush3.msra.mxu0 %v268_v22  ;;  %v367_v53 = vld [vmem:[%s610_s6] ss:$0 sm:$0xff] }
  0x2a   :  { %424 = vmatprep.subr.mxu1 %v161_v9  ;;  %455 = vmatprep.subr.mxu0 %v267_v23 }
  0x2b   :  { %425 = vmatpush3.msra.mxu1 %v161_v9  ;;  %456 = vmatpush3.msra.mxu0 %v267_v23 }
  0x2c   :  { %426 = vmatprep.subr.mxu1 %v160_v10  ;;  %457 = vmatprep.subr.mxu0 %v266_v24 }
  0x2d   :  { %427 = vmatpush3.msra.mxu1 %v160_v10  ;;  %458 = vmatpush3.msra.mxu0 %v266_v24 }
  0x2e   :  { %428 = vmatprep.subr.mxu1 %v159_v11  ;;  %459 = vmatprep.subr.mxu0 %v265_v25 }
  0x2f   :  { %429 = vmatpush3.msra.mxu1 %v159_v11  ;;  %460 = vmatpush3.msra.mxu0 %v265_v25 }
  0x30   :  { %430 = vmatprep.subr.mxu1 %v158_v12  ;;  %461 = vmatprep.subr.mxu0 %v264_v26 }
  0x31   :  { %431 = vmatpush3.msra.mxu1 %v158_v12  ;;  %462 = vmatpush3.msra.mxu0 %v264_v26 }
  0x32   :  { %432 = vmatprep.subr.mxu1 %v157_v13  ;;  %463 = vmatprep.subr.mxu0 %v263_v27 }
  0x33   :  { %433 = vmatpush3.msra.mxu1 %v157_v13  ;;  %464 = vmatpush3.msra.mxu0 %v263_v27 }
  0x34   :  { %434 = vmatprep.subr.mxu1 %v156_v14  ;;  %465 = vmatprep.subr.mxu0 %v262_v28 }
  0x35   :  { %435 = vmatpush3.msra.mxu1 %v156_v14  ;;  %466 = vmatpush3.msra.mxu0 %v262_v28 }
  0x36   :  { %436 = vmatprep.subr.mxu1 %v155_v15  ;;  %467 = vmatprep.subr.mxu0 %v261_v29 }
  0x37   :  { %437 = vmatpush3.msra.mxu1 %v155_v15  ;;  %468 = vmatpush3.msra.mxu0 %v261_v29 }
  0x38   :  { %438 = vmatprep.subr.mxu1 %v154_v16  ;;  %469 = vmatprep.subr.mxu0 %v260_v30 }
  0x39   :  { %439 = vmatpush3.msra.mxu1 %v154_v16  ;;  %470 = vmatpush3.msra.mxu0 %v260_v30 }
  0x3a   :  { %440 = vmatprep.subr.mxu1 %v153_v17  ;;  %471 = vmatprep.subr.mxu0 %v259_v40 }
  0x3b   :  { %441 = vmatpush3.msra.mxu1 %v153_v17  ;;  %472 = vmatpush3.msra.mxu0 %v259_v40 }
  0x3c   :  { %442 = vmatprep.subr.mxu1 %v152_v18  ;;  %473 = vmatprep.subr.mxu0 %v258_v41 }
  0x3d   :  { %443 = vmatpush3.msra.mxu1 %v152_v18  ;;  %474 = vmatpush3.msra.mxu0 %v258_v41 }
  0x3e   :  { %475 = vmatprep.subr.mxu0 %v257_v42 }
  0x3f   :  { %476 = vmatpush3.msra.mxu0 %v257_v42 }
  0x40   :  { %477 = vmatprep.subr.mxu0 %v256_v43 }
  0x41   :  { %478 = vmatpush3.msra.mxu0 %v256_v43 }
  0xde   :  { %v411_v32 = vpop.f32.mrf.mxu0 }
  0xdf   :  { %v143_v33 = vadd.f32 %v411_v32, %v363_v31 }
  0xe0   :  { %v137_v34 = vpop.f32.mrf.mxu0 }
  0xe1   :  { %v138_v35 = vadd.f32 %v363_v31, %v137_v34  ;;  %v149_v36 = vmul.f32 0.01, %v143_v33  ;;  %vm147_vm2 = vcmp.ge.f32.partialorder %v143_v33, 0.0 }
  0xe3   :  { %vm146_vm1 = vcmp.ge.f32.partialorder %v138_v35, 0.0  ;;  %v148_v37 = vmul.f32 0.01, %v138_v35  ;;  %v151_v39 = vsel %vm147_vm2, %v143_v33, %v149_v36 }
  0xe5   :  { %v150_v38 = vsel %vm146_vm1, %v138_v35, %v148_v37 }
  0xe6   :  { %444 = vmatprep.mubr.f32.mxu1 %v150_v38 }
  0xe7   :  { %445 = vmatmul.mubr.f32.vlgmr.msra.gmra.mxu1 %v151_v39 }
 0x1a7   :  { %v446_v45 = vpop.f32.mrf.mxu1 }
 0x1a8   :  { %v247_v46 = vadd.f32 %v446_v45, %v366_v44 }
 0x1a9   :  { %v241_v47 = vpop.f32.mrf.mxu1 }
 0x1aa   :  { %v242_v48 = vadd.f32 %v366_v44, %v241_v47  ;;  %v253_v49 = vmul.f32 0.01, %v247_v46  ;;  %vm251_vm3 = vcmp.ge.f32.partialorder %v247_v46, 0.0 }
 0x1ac   :  { %v252_v50 = vmul.f32 0.01, %v242_v48  ;;  %vm250_vm4 = vcmp.ge.f32.partialorder %v242_v48, 0.0  ;;  %v255_v52 = vsel %vm251_vm3, %v247_v46, %v253_v49 }
 0x1ae   :  { %v254_v51 = vsel %vm250_vm4, %v242_v48, %v252_v50 }
 0x1af   :  { %479 = vmatprep.mubr.f32.mxu0 %v254_v51 }
 0x1b0   :  { %480 = vmatmul.mubr.f32.vlgmr.msra.gmra.mxu0 %v255_v52 }
 0x270   :  { %v481_v54 = vpop.f32.mrf.mxu0 }
 0x271   :  { %v351_v55 = vadd.f32 %v481_v54, %v367_v53 }
 0x272   :  { %v345_v56 = vpop.f32.mrf.mxu0 }
 0x273   :  { %356 = vst.msk [vmem:[%s611_s7 + $0x8] sm:$0xff] %vm354_vm5, %v351_v55  ;;  %v346_v57 = vadd.f32 %v367_v53, %v345_v56 }
 0x275   :  { %355 = vst.msk [vmem:[%s611_s7] sm:$0xff] %vm354_vm5, %v346_v57 }
 0x276   :  { %361 = vsyncpa [#allocation3], 1 }
 0x277   :  { %362 = vsyncpa [#allocation5], 1 }

</bundles_post_ra>
